<compile_context>
chip_gen: v5e
topology: v5e:2x2
jax: 0.10.0
libtpu: 0.0.40
codegen_flags: <defaults>
</compile_context>

<pallas_src>
import functools

import jax
import jax.numpy as jnp
from jax.experimental import pallas as pl
from jax.experimental.pallas import tpu as pltpu

_LANE = 128
_SUBLANE = 8
_NUM_TASKS = 4
_DEFAULT_TILE_N = 1024          # per perf review: 256 -> 1024 rows per step
_GRIDLESS_VMEM_BUDGET = 8 << 20  # conservative across v5e / v6e / v7x


def _round_up(x, m):
    return ((x + m - 1) // m) * m


# --------------------------------------------------------------------------
# Gridless fused kernel: 4 tasks, whole arrays resident in VMEM, 1 invocation.
# --------------------------------------------------------------------------
def _make_fused_kernel(num_tasks, n):
    inv_n = 1.0 / float(n)

    def kernel(*refs):
        logit_refs = refs[:num_tasks]
        label_refs = refs[num_tasks:2 * num_tasks]
        out_ref = refs[2 * num_tasks]

        rows = []
        for t in range(num_tasks):                      # trace-time unroll
            logits = logit_refs[t][...].astype(jnp.float32)      # (N, C_t)
            labels = label_refs[t][...]                          # (N, 1) i32
            nr, c = logits.shape

            # Numerically stable log-softmax denominator (all f32).
            row_max = jnp.max(logits, axis=-1, keepdims=True)
            lse = jnp.log(jnp.sum(jnp.exp(logits - row_max),
                                  axis=-1, keepdims=True)) + row_max
            # One-hot gather of the label logit (no cross-lane gather).
            col = jax.lax.broadcasted_iota(jnp.int32, (nr, c), 1)
            picked = jnp.sum(jnp.where(col == labels, logits, 0.0),
                             axis=-1, keepdims=True)             # (N, 1)
            loss_t = jnp.sum(lse - picked, axis=0, keepdims=True) * inv_n  # (1,1)
            rows.append(jnp.broadcast_to(loss_t, (1, _LANE)))
        rows.append(jnp.zeros((_SUBLANE - num_tasks, _LANE), jnp.float32))
        # Single lane-dense unmasked store; wrapper reads column 0.
        out_ref[...] = jnp.concatenate(rows, axis=0)

    return kernel


# --------------------------------------------------------------------------
# Batch-tiled kernel (large N): grid = (num_tiles,) "arbitrary", all 4 tasks
# folded into every step, resident (8, 128) accumulator, partial last tile
# handled by in-kernel row masking (no wrapper padding copy).
# --------------------------------------------------------------------------
def _make_tiled_kernel(num_tasks, n, tile_n):
    inv_n = 1.0 / float(n)

    def kernel(*refs):
        logit_refs = refs[:num_tasks]
        label_refs = refs[num_tasks:2 * num_tasks]
        out_ref = refs[2 * num_tasks]
        step = pl.program_id(0)

        @pl.when(step == 0)
        def _init():
            out_ref[...] = jnp.zeros_like(out_ref)

        row0 = step * tile_n
        rows = []
        for t in range(num_tasks):
            logits = logit_refs[t][...].astype(jnp.float32)       # (TN, C_t)
            labels = label_refs[t][...]                           # (TN, 1)
            tn, c = logits.shape

            # Mask rows beyond N (partial last block may contain garbage).
            valid = (jax.lax.broadcasted_iota(jnp.int32, (tn, 1), 0) + row0) < n
            logits = jnp.where(valid, logits, 0.0)                # scrub NaNs/garbage

            row_max = jnp.max(logits, axis=-1, keepdims=True)
            lse = jnp.log(jnp.sum(jnp.exp(logits - row_max),
                                  axis=-1, keepdims=True)) + row_max
            col = jax.lax.broadcasted_iota(jnp.int32, (tn, c), 1)
            picked = jnp.sum(jnp.where(col == labels, logits, 0.0),
                             axis=-1, keepdims=True)
            per_row = jnp.where(valid, lse - picked, 0.0)
            partial = jnp.sum(per_row, axis=0, keepdims=True)     # (1, 1)
            rows.append(jnp.broadcast_to(partial, (1, _LANE)))
        rows.append(jnp.zeros((_SUBLANE - num_tasks, _LANE), jnp.float32))
        out_ref[...] += jnp.concatenate(rows, axis=0)

        @pl.when(step == pl.num_programs(0) - 1)
        def _finalize():
            out_ref[...] = out_ref[...] * inv_n

    return kernel


# --------------------------------------------------------------------------
# VMEM / cost bookkeeping (static shapes -> Python ints).
# --------------------------------------------------------------------------
def _gridless_vmem_bytes(preds):
    total = _SUBLANE * _LANE * 4
    for p in preds:
        npad = _round_up(p.shape[0], _SUBLANE)
        cpad = _round_up(p.shape[1], _LANE)
        total += npad * cpad * p.dtype.itemsize   # input block (native dtype)
        total += npad * cpad * 4                  # f32 upcast / softmax temps
        total += npad * _LANE * 4                 # lane-padded (N,1) labels
    return total


def _tiled_vmem_bytes(preds, tile_n):
    total = 2 * _SUBLANE * _LANE * 4
    for p in preds:
        cpad = _round_up(p.shape[1], _LANE)
        total += 2 * tile_n * cpad * p.dtype.itemsize   # double-buffered input
        total += tile_n * cpad * 4                      # f32 working copy
        total += 2 * tile_n * _LANE * 4                 # double-buffered labels
    return total


def _cost_estimate(preds):
    flops = transcend = bytes_acc = 0
    for p in preds:
        nc = p.shape[0] * p.shape[1]
        flops += 6 * nc                 # max/sub/sum/cmp/select/reduce per elem
        transcend += nc                 # exp per element (+ a log per row, noise)
        bytes_acc += nc * p.dtype.itemsize
        bytes_acc += p.shape[0] * 4     # labels
    bytes_acc += _SUBLANE * _LANE * 4
    return pl.CostEstimate(flops=flops, transcendentals=transcend,
                           bytes_accessed=bytes_acc)


# --------------------------------------------------------------------------
# Wrapper: tuple of native-shape logits + tuple of (N,) labels -> (T,) losses
# --------------------------------------------------------------------------
def _fused_loss(preds, labels, *, force_tile_n=None):
    preds = tuple(preds)
    num_tasks = len(preds)
    n = preds[0].shape[0]
    labels2d = tuple(jnp.asarray(l).astype(jnp.int32).reshape(n, 1)
                     for l in labels)
    cost = _cost_estimate(preds)

    if force_tile_n is None and _gridless_vmem_bytes(preds) <= _GRIDLESS_VMEM_BUDGET:
        # Gridless: whole arrays in VMEM, one invocation, no pipeline prologue.
        out = pl.pallas_call(
            _make_fused_kernel(num_tasks, n),
            out_shape=jax.ShapeDtypeStruct((_SUBLANE, _LANE), jnp.float32),
            cost_estimate=cost,
        )(*preds, *labels2d)
        return out[:num_tasks, 0]

    # ---- batch-tiled accumulator path (training-size N) ----
    tile_n = _DEFAULT_TILE_N if force_tile_n is None else force_tile_n
    tile_n = min(tile_n, _round_up(n, _SUBLANE))
    num_tiles = pl.cdiv(n, tile_n)

    in_specs = []
    for p in preds:
        in_specs.append(pl.BlockSpec((tile_n, p.shape[1]), lambda i: (i, 0)))
    for _ in preds:
        in_specs.append(pl.BlockSpec((tile_n, 1), lambda i: (i, 0)))

    vmem_limit = int(min(64 << 20,
                         max(32 << 20, 2 * _tiled_vmem_bytes(preds, tile_n))))

    out = pl.pallas_call(
        _make_tiled_kernel(num_tasks, n, tile_n),
        out_shape=jax.ShapeDtypeStruct((_SUBLANE, _LANE), jnp.float32),
        grid=(num_tiles,),
        in_specs=in_specs,
        out_specs=pl.BlockSpec((_SUBLANE, _LANE), lambda i: (0, 0)),
        compiler_params=pltpu.CompilerParams(
            dimension_semantics=("arbitrary",),
            vmem_limit_bytes=vmem_limit),
        cost_estimate=cost,
    )(*preds, *labels2d)
    return out[:num_tasks, 0]


@jax.jit
def _multitask_ce(weights, verb_p, target_p, vt_p, ivt_p,
                  verb_l, target_l, vt_l, ivt_l):
    losses = _fused_loss((verb_p, target_p, vt_p, ivt_p),
                         (verb_l, target_l, vt_l, ivt_l))
    total = jnp.sum(weights.astype(jnp.float32) * losses)
    return total, losses


class MultiTaskLossFourTasksPallas:
    """JAX/Pallas port of resnet_model/loss.py::MultiTaskLossFourTasks
    (the `use_wce=False` branch: plain CrossEntropyLoss per task)."""

    def __init__(self,
                 verb_multitask_weight=1.0,
                 target_multitask_weight=1.0,
                 verbtarget_multitask_weight=1.0,
                 ivt_multitask_weight=1.0):
        # NOTE: the reference PyTorch code falls back to
        # config.verbtarget_multitask_weight for the ivt weight (likely a bug);
        # with default configs all weights are 1.0, which we reproduce.
        self._weights = jnp.asarray(
            [verb_multitask_weight, target_multitask_weight,
             verbtarget_multitask_weight, ivt_multitask_weight],
            dtype=jnp.float32)

    def __call__(self, verb_preds, target_preds, verbtarget_preds, ivt_preds,
                 verb_labels, target_labels, verbtarget_labels, ivt_labels):
        total, losses = _multitask_ce(
            self._weights,
            verb_preds, target_preds, verbtarget_preds, ivt_preds,
            verb_labels, target_labels, verbtarget_labels, ivt_labels)
        # Device scalars (no blocking .item()/float() host syncs); callers can
        # convert lazily with float(...) when they actually need Python values.
        loss_dict = {
            "loss_verb": losses[0],
            "loss_target": losses[1],
            "loss_verbtarget": losses[2],
            "loss_ivt": losses[3],
        }
        return total, loss_dict


# --------------------------------------------------------------------------
# Pure-JAX reference for correctness checking.
# --------------------------------------------------------------------------
def _reference_ce(logits, labels):
    logits = logits.astype(jnp.float32)
    lse = jax.scipy.special.logsumexp(logits, axis=-1)
    picked = jnp.take_along_axis(
        logits, labels[:, None].astype(jnp.int32), axis=-1)[:, 0]
    return jnp.mean(lse - picked)


if __name__ == "__main__":
    key = jax.random.PRNGKey(0)
    batch = 8
    n_verb, n_target, n_verbtarget, n_ivt = 10, 15, 32, 64

    keys = jax.random.split(key, 8)
    verb_preds = jax.random.normal(keys[0], (batch, n_verb), dtype=jnp.float32)
    target_preds = jax.random.normal(keys[1], (batch, n_target), dtype=jnp.float32)
    verbtarget_preds = jax.random.normal(keys[2], (batch, n_verbtarget), dtype=jnp.float32)
    ivt_preds = jax.random.normal(keys[3], (batch, n_ivt), dtype=jnp.float32)

    verb_labels = jax.random.randint(keys[4], (batch,), 0, n_verb, dtype=jnp.int32)
    target_labels = jax.random.randint(keys[5], (batch,), 0, n_target, dtype=jnp.int32)
    verbtarget_labels = jax.random.randint(keys[6], (batch,), 0, n_verbtarget, dtype=jnp.int32)
    ivt_labels = jax.random.randint(keys[7], (batch,), 0, n_ivt, dtype=jnp.int32)

    loss_fn = MultiTaskLossFourTasksPallas()
    total_loss, loss_dict = loss_fn(
        verb_preds, target_preds, verbtarget_preds, ivt_preds,
        verb_labels, target_labels, verbtarget_labels, ivt_labels)
    total_loss = jax.block_until_ready(total_loss)

    # --- check 1: fused gridless path vs pure-JAX reference ---
    refs = [
        _reference_ce(verb_preds, verb_labels),
        _reference_ce(target_preds, target_labels),
        _reference_ce(verbtarget_preds, verbtarget_labels),
        _reference_ce(ivt_preds, ivt_labels),
    ]
    ref_total = sum(refs)
    assert jnp.allclose(total_loss, ref_total, atol=1e-5, rtol=1e-5), (
        total_loss, ref_total)
    for name, r in zip(
            ["loss_verb", "loss_target", "loss_verbtarget", "loss_ivt"], refs):
        assert jnp.allclose(loss_dict[name], r, atol=1e-5, rtol=1e-5), (name,)

    # --- check 2: exercise the batch-tiled accumulator path (small tile,
    #              N not a multiple of the tile to hit the row masking) ---
    batch2 = 40
    keys2 = jax.random.split(jax.random.PRNGKey(1), 8)
    preds2 = (
        jax.random.normal(keys2[0], (batch2, n_verb), dtype=jnp.float32),
        jax.random.normal(keys2[1], (batch2, n_target), dtype=jnp.float32),
        jax.random.normal(keys2[2], (batch2, n_verbtarget), dtype=jnp.float32),
        jax.random.normal(keys2[3], (batch2, n_ivt), dtype=jnp.float32),
    )
    labels2 = (
        jax.random.randint(keys2[4], (batch2,), 0, n_verb, dtype=jnp.int32),
        jax.random.randint(keys2[5], (batch2,), 0, n_target, dtype=jnp.int32),
        jax.random.randint(keys2[6], (batch2,), 0, n_verbtarget, dtype=jnp.int32),
        jax.random.randint(keys2[7], (batch2,), 0, n_ivt, dtype=jnp.int32),
    )
    tiled_fn = jax.jit(functools.partial(_fused_loss, force_tile_n=16))
    tiled_losses = jax.block_until_ready(tiled_fn(preds2, labels2))
    for i in range(4):
        r = _reference_ce(preds2[i], labels2[i])
        assert jnp.allclose(tiled_losses[i], r, atol=1e-5, rtol=1e-5), (i,)

    print("KERNEL_OK")
</pallas_src>

<mosaic_0001>
module attributes {stable_mosaic.version = 11 : i64} {
  func.func @kernel(%arg0: memref<8x10xf32, #tpu.memory_space<vmem>>, %arg1: memref<8x15xf32, #tpu.memory_space<vmem>>, %arg2: memref<8x32xf32, #tpu.memory_space<vmem>>, %arg3: memref<8x64xf32, #tpu.memory_space<vmem>>, %arg4: memref<8x1xi32, #tpu.memory_space<vmem>>, %arg5: memref<8x1xi32, #tpu.memory_space<vmem>>, %arg6: memref<8x1xi32, #tpu.memory_space<vmem>>, %arg7: memref<8x1xi32, #tpu.memory_space<vmem>>, %arg8: memref<8x128xf32, #tpu.memory_space<vmem>>) attributes {dimension_semantics = [], scalar_prefetch = 0 : i64, scratch_operands = 0 : i64, tpu.core_type = #tpu.core_type<tc>} {
    %c0 = arith.constant 0 : index
    %c0_0 = arith.constant 0 : index
    %0 = vector.load %arg0[%c0, %c0_0] : memref<8x10xf32, #tpu.memory_space<vmem>>, vector<8x10xf32>
    %c0_1 = arith.constant 0 : index
    %c0_2 = arith.constant 0 : index
    %1 = vector.load %arg4[%c0_1, %c0_2] : memref<8x1xi32, #tpu.memory_space<vmem>>, vector<8x1xi32>
    %cst = arith.constant dense<0xFF800000> : vector<8xf32>
    %2 = vector.multi_reduction <maximumf>, %0, %cst [1] : vector<8x10xf32> to vector<8xf32>
    %3 = vector.shape_cast %2 : vector<8xf32> to vector<8x1xf32>
    %4 = vector.broadcast %3 : vector<8x1xf32> to vector<8x10xf32>
    %5 = arith.subf %0, %4 : vector<8x10xf32>
    %6 = math.exp %5 : vector<8x10xf32>
    %cst_3 = arith.constant dense<0.000000e+00> : vector<8xf32>
    %7 = vector.multi_reduction <add>, %6, %cst_3 [1] : vector<8x10xf32> to vector<8xf32>
    %8 = vector.shape_cast %7 : vector<8xf32> to vector<8x1xf32>
    %9 = math.log %8 : vector<8x1xf32>
    %10 = arith.addf %9, %3 : vector<8x1xf32>
    %11 = tpu.iota {dimensions = array<i32: 1>} : vector<8x10xi32>
    %12 = vector.broadcast %1 : vector<8x1xi32> to vector<8x10xi32>
    %13 = arith.cmpi eq, %11, %12 : vector<8x10xi32>
    %cst_4 = arith.constant 0.000000e+00 : f32
    %14 = vector.broadcast %cst_4 : f32 to vector<8x10xf32>
    %15 = arith.select %13, %0, %14 : vector<8x10xi1>, vector<8x10xf32>
    %cst_5 = arith.constant dense<0.000000e+00> : vector<8xf32>
    %16 = vector.multi_reduction <add>, %15, %cst_5 [1] : vector<8x10xf32> to vector<8xf32>
    %17 = vector.shape_cast %16 : vector<8xf32> to vector<8x1xf32>
    %18 = arith.subf %10, %17 : vector<8x1xf32>
    %cst_6 = arith.constant dense<0.000000e+00> : vector<1xf32>
    %19 = vector.multi_reduction <add>, %18, %cst_6 [0] : vector<8x1xf32> to vector<1xf32>
    %20 = vector.shape_cast %19 : vector<1xf32> to vector<1x1xf32>
    %cst_7 = arith.constant 1.250000e-01 : f32
    %21 = vector.broadcast %cst_7 : f32 to vector<1x1xf32>
    %22 = arith.mulf %20, %21 : vector<1x1xf32>
    %23 = vector.shape_cast %22 : vector<1x1xf32> to vector<1x1xf32>
    %24 = vector.broadcast %23 : vector<1x1xf32> to vector<1x128xf32>
    %c0_8 = arith.constant 0 : index
    %c0_9 = arith.constant 0 : index
    %25 = vector.load %arg1[%c0_8, %c0_9] : memref<8x15xf32, #tpu.memory_space<vmem>>, vector<8x15xf32>
    %c0_10 = arith.constant 0 : index
    %c0_11 = arith.constant 0 : index
    %26 = vector.load %arg5[%c0_10, %c0_11] : memref<8x1xi32, #tpu.memory_space<vmem>>, vector<8x1xi32>
    %cst_12 = arith.constant dense<0xFF800000> : vector<8xf32>
    %27 = vector.multi_reduction <maximumf>, %25, %cst_12 [1] : vector<8x15xf32> to vector<8xf32>
    %28 = vector.shape_cast %27 : vector<8xf32> to vector<8x1xf32>
    %29 = vector.broadcast %28 : vector<8x1xf32> to vector<8x15xf32>
    %30 = arith.subf %25, %29 : vector<8x15xf32>
    %31 = math.exp %30 : vector<8x15xf32>
    %cst_13 = arith.constant dense<0.000000e+00> : vector<8xf32>
    %32 = vector.multi_reduction <add>, %31, %cst_13 [1] : vector<8x15xf32> to vector<8xf32>
    %33 = vector.shape_cast %32 : vector<8xf32> to vector<8x1xf32>
    %34 = math.log %33 : vector<8x1xf32>
    %35 = arith.addf %34, %28 : vector<8x1xf32>
    %36 = tpu.iota {dimensions = array<i32: 1>} : vector<8x15xi32>
    %37 = vector.broadcast %26 : vector<8x1xi32> to vector<8x15xi32>
    %38 = arith.cmpi eq, %36, %37 : vector<8x15xi32>
    %cst_14 = arith.constant 0.000000e+00 : f32
    %39 = vector.broadcast %cst_14 : f32 to vector<8x15xf32>
    %40 = arith.select %38, %25, %39 : vector<8x15xi1>, vector<8x15xf32>
    %cst_15 = arith.constant dense<0.000000e+00> : vector<8xf32>
    %41 = vector.multi_reduction <add>, %40, %cst_15 [1] : vector<8x15xf32> to vector<8xf32>
    %42 = vector.shape_cast %41 : vector<8xf32> to vector<8x1xf32>
    %43 = arith.subf %35, %42 : vector<8x1xf32>
    %cst_16 = arith.constant dense<0.000000e+00> : vector<1xf32>
    %44 = vector.multi_reduction <add>, %43, %cst_16 [0] : vector<8x1xf32> to vector<1xf32>
    %45 = vector.shape_cast %44 : vector<1xf32> to vector<1x1xf32>
    %cst_17 = arith.constant 1.250000e-01 : f32
    %46 = vector.broadcast %cst_17 : f32 to vector<1x1xf32>
    %47 = arith.mulf %45, %46 : vector<1x1xf32>
    %48 = vector.shape_cast %47 : vector<1x1xf32> to vector<1x1xf32>
    %49 = vector.broadcast %48 : vector<1x1xf32> to vector<1x128xf32>
    %c0_18 = arith.constant 0 : index
    %c0_19 = arith.constant 0 : index
    %50 = vector.load %arg2[%c0_18, %c0_19] : memref<8x32xf32, #tpu.memory_space<vmem>>, vector<8x32xf32>
    %c0_20 = arith.constant 0 : index
    %c0_21 = arith.constant 0 : index
    %51 = vector.load %arg6[%c0_20, %c0_21] : memref<8x1xi32, #tpu.memory_space<vmem>>, vector<8x1xi32>
    %cst_22 = arith.constant dense<0xFF800000> : vector<8xf32>
    %52 = vector.multi_reduction <maximumf>, %50, %cst_22 [1] : vector<8x32xf32> to vector<8xf32>
    %53 = vector.shape_cast %52 : vector<8xf32> to vector<8x1xf32>
    %54 = vector.broadcast %53 : vector<8x1xf32> to vector<8x32xf32>
    %55 = arith.subf %50, %54 : vector<8x32xf32>
    %56 = math.exp %55 : vector<8x32xf32>
    %cst_23 = arith.constant dense<0.000000e+00> : vector<8xf32>
    %57 = vector.multi_reduction <add>, %56, %cst_23 [1] : vector<8x32xf32> to vector<8xf32>
    %58 = vector.shape_cast %57 : vector<8xf32> to vector<8x1xf32>
    %59 = math.log %58 : vector<8x1xf32>
    %60 = arith.addf %59, %53 : vector<8x1xf32>
    %61 = tpu.iota {dimensions = array<i32: 1>} : vector<8x32xi32>
    %62 = vector.broadcast %51 : vector<8x1xi32> to vector<8x32xi32>
    %63 = arith.cmpi eq, %61, %62 : vector<8x32xi32>
    %cst_24 = arith.constant 0.000000e+00 : f32
    %64 = vector.broadcast %cst_24 : f32 to vector<8x32xf32>
    %65 = arith.select %63, %50, %64 : vector<8x32xi1>, vector<8x32xf32>
    %cst_25 = arith.constant dense<0.000000e+00> : vector<8xf32>
    %66 = vector.multi_reduction <add>, %65, %cst_25 [1] : vector<8x32xf32> to vector<8xf32>
    %67 = vector.shape_cast %66 : vector<8xf32> to vector<8x1xf32>
    %68 = arith.subf %60, %67 : vector<8x1xf32>
    %cst_26 = arith.constant dense<0.000000e+00> : vector<1xf32>
    %69 = vector.multi_reduction <add>, %68, %cst_26 [0] : vector<8x1xf32> to vector<1xf32>
    %70 = vector.shape_cast %69 : vector<1xf32> to vector<1x1xf32>
    %cst_27 = arith.constant 1.250000e-01 : f32
    %71 = vector.broadcast %cst_27 : f32 to vector<1x1xf32>
    %72 = arith.mulf %70, %71 : vector<1x1xf32>
    %73 = vector.shape_cast %72 : vector<1x1xf32> to vector<1x1xf32>
    %74 = vector.broadcast %73 : vector<1x1xf32> to vector<1x128xf32>
    %c0_28 = arith.constant 0 : index
    %c0_29 = arith.constant 0 : index
    %75 = vector.load %arg3[%c0_28, %c0_29] : memref<8x64xf32, #tpu.memory_space<vmem>>, vector<8x64xf32>
    %c0_30 = arith.constant 0 : index
    %c0_31 = arith.constant 0 : index
    %76 = vector.load %arg7[%c0_30, %c0_31] : memref<8x1xi32, #tpu.memory_space<vmem>>, vector<8x1xi32>
    %cst_32 = arith.constant dense<0xFF800000> : vector<8xf32>
    %77 = vector.multi_reduction <maximumf>, %75, %cst_32 [1] : vector<8x64xf32> to vector<8xf32>
    %78 = vector.shape_cast %77 : vector<8xf32> to vector<8x1xf32>
    %79 = vector.broadcast %78 : vector<8x1xf32> to vector<8x64xf32>
    %80 = arith.subf %75, %79 : vector<8x64xf32>
    %81 = math.exp %80 : vector<8x64xf32>
    %cst_33 = arith.constant dense<0.000000e+00> : vector<8xf32>
    %82 = vector.multi_reduction <add>, %81, %cst_33 [1] : vector<8x64xf32> to vector<8xf32>
    %83 = vector.shape_cast %82 : vector<8xf32> to vector<8x1xf32>
    %84 = math.log %83 : vector<8x1xf32>
    %85 = arith.addf %84, %78 : vector<8x1xf32>
    %86 = tpu.iota {dimensions = array<i32: 1>} : vector<8x64xi32>
    %87 = vector.broadcast %76 : vector<8x1xi32> to vector<8x64xi32>
    %88 = arith.cmpi eq, %86, %87 : vector<8x64xi32>
    %cst_34 = arith.constant 0.000000e+00 : f32
    %89 = vector.broadcast %cst_34 : f32 to vector<8x64xf32>
    %90 = arith.select %88, %75, %89 : vector<8x64xi1>, vector<8x64xf32>
    %cst_35 = arith.constant dense<0.000000e+00> : vector<8xf32>
    %91 = vector.multi_reduction <add>, %90, %cst_35 [1] : vector<8x64xf32> to vector<8xf32>
    %92 = vector.shape_cast %91 : vector<8xf32> to vector<8x1xf32>
    %93 = arith.subf %85, %92 : vector<8x1xf32>
    %cst_36 = arith.constant dense<0.000000e+00> : vector<1xf32>
    %94 = vector.multi_reduction <add>, %93, %cst_36 [0] : vector<8x1xf32> to vector<1xf32>
    %95 = vector.shape_cast %94 : vector<1xf32> to vector<1x1xf32>
    %cst_37 = arith.constant 1.250000e-01 : f32
    %96 = vector.broadcast %cst_37 : f32 to vector<1x1xf32>
    %97 = arith.mulf %95, %96 : vector<1x1xf32>
    %98 = vector.shape_cast %97 : vector<1x1xf32> to vector<1x1xf32>
    %99 = vector.broadcast %98 : vector<1x1xf32> to vector<1x128xf32>
    %cst_38 = arith.constant 0.000000e+00 : f32
    %100 = vector.broadcast %cst_38 : f32 to vector<4x128xf32>
    %101 = tpu.concatenate %24, %49, %74, %99, %100 in 0 : vector<1x128xf32>, vector<1x128xf32>, vector<1x128xf32>, vector<1x128xf32>, vector<4x128xf32> -> vector<8x128xf32>
    %c0_39 = arith.constant 0 : index
    %c0_40 = arith.constant 0 : index
    %102 = vector.load %arg8[%c0_39, %c0_40] : memref<8x128xf32, #tpu.memory_space<vmem>>, vector<8x128xf32>
    tpu.vector_store %arg8[%c0_39, %c0_40], %101 {strides = array<i32>} : memref<8x128xf32, #tpu.memory_space<vmem>>, vector<8x128xf32>,
    return
  }
}

</mosaic_0001>

<bundles_post_ra>
// kernel: _multitask_ce.1
= control target key start
LH: loop header
LB: loop body
LE: loop exit
PB: predicated region body
PF: predicated region fallthrough
CT: control target
= control target key end

     0   :  { %vm95_vm0 = vcmask 261120   ;;  %vm31_vm1 = vcmask 80896   ;;  %v188_v0 = vmov 0   ;;  %vm126_vm2 = vcmask 523264   ;;  %s286_s4 = inlined_call_operand.vmem [shape: s32[8,1], index: 4, kind: input, shape index: {}]   ;;  %s287_s2 = inlined_call_operand.vmem [shape: f32[8,32], index: 2, kind: input, shape index: {}]   ;;  %s288_s0 = inlined_call_operand.vmem [shape: f32[8,10], index: 0, kind: input, shape index: {}]   ;;  %s289_s3 = inlined_call_operand.vmem [shape: f32[8,64], index: 3, kind: input, shape index: {}]   ;;  %s290_s5 = inlined_call_operand.vmem [shape: s32[8,1], index: 5, kind: input, shape index: {}]   ;;  %s291_s6 = inlined_call_operand.vmem [shape: s32[8,1], index: 6, kind: input, shape index: {}]   ;;  %s292_s1 = inlined_call_operand.vmem [shape: f32[8,15], index: 1, kind: input, shape index: {}]   ;;  %s293_s7 = inlined_call_operand.vmem [shape: s32[8,1], index: 7, kind: input, shape index: {}]   ;;  %s294_s8 = inlined_call_operand.vmem [shape: f32[8,128], index: 8, kind: output, shape index: {}]  }
   0x1   :  { %169 = vset.pattern.permute.xlu1 %v188_v0  ;;  %v30_v1 = vld [vmem:[%s286_s4] sm:$0xff]  ;;  %170 = vset.pattern.permute.xlu0 %v188_v0  ;;  %vm64_vm3 = vcmask 121856   ;;  %v44_v19 = vlaneseq  ;;  %vm155_vm8 = vcmask 1040384   ;;  %vm157_vm9 = vcmask 1041408  }
   0x2   :  { %v240_v2 = vld [vmem:[%s287_s2] sm:$0xff]  ;;  %47 = vperm.xlu1 %169, %v30_v1   ;;  %171 = vset.pattern.permute.xlu2 %v188_v0  ;;  %vm159_vm10 = vcmask 1042432   ;;  %vm161_vm11 = vcmask 1043456  }
   0x3   :  { %v29_v3 = vld [vmem:[%s288_s0] sm:$0xff]  ;;  %v96_v4 = vsel %vm95_vm0, %v240_v2, -inf  ;;  %v45_v22 = vand.u32 127, %v44_v19 }
   0x4   :  { %v32_v5 = vsel %vm31_vm1, %v29_v3, -inf  ;;  %97 = vmax.xlane.f32.xlu2 %v96_v4  ;;  %v124_v6 = vld [vmem:[%s289_s3] sm:$0xff] }
   0x5   :  { %33 = vmax.xlane.f32.xlu0 %v32_v5  ;;  %v127_v7 = vsel %vm126_vm2, %v124_v6, -inf  ;;  %v63_v8 = vld [vmem:[%s290_s5] sm:$0xff] }
   0x6   :  { %v94_v9 = vld [vmem:[%s291_s6] sm:$0xff] }
   0x7   :  { %v62_v10 = vld [vmem:[%s292_s1] sm:$0xff] }
   0x8   :  { %v125_v11 = vld [vmem:[%s293_s7] sm:$0xff]  ;;  %v65_v12 = vsel %vm64_vm3, %v62_v10, -inf }
   0xc   :  { %128 = vmax.xlane.f32.xlu2 %v127_v7 }
  0x19   :  { %78 = vperm.xlu0 %170, %v63_v8  }
  0x24   :  { %109 = vperm.xlu2 %171, %v94_v9  }
  0x2c   :  { %140 = vperm.xlu2 %171, %v125_v11   ;;  %66 = vmax.xlane.f32.xlu1 %v65_v12 }
  0x74   :  { %v48_v24 = vpop.permute.xlu1 %47 }
  0x75   :  { %vm49_vm4 = vcmp.eq.s32.totalorder %v45_v22, %v48_v24 }
  0x76   :  { %v50_v29 = vsel %vm49_vm4, %v29_v3, 0.0 }
  0x77   :  { %v265_v13 = vpop.xlane.xlu2 %97  ;;  %v51_v32 = vsel %vm31_vm1, %v50_v29, 0.0 }
  0x78   :  { %v267_v14 = vpop.xlane.xlu0 %33  ;;  %v99_v15 = vsub.f32 %v240_v2, %v265_v13 }
  0x79   :  { %v35_v16 = vsub.f32 %v29_v3, %v267_v14 }
  0x7a   :  { %v100_v17 = vmul.f32 1.442695, %v99_v15 }
  0x7b   :  { %v36_v18 = vmul.f32 1.442695, %v35_v16 }
  0x7c   :  { %172 = vpow2.f32 %v100_v17 }
  0x7d   :  { %174 = vpow2.f32 %v36_v18 }
  0x7f   :  { %v129_v20 = vpop.xlane.xlu2 %128 }
  0x80   :  { %v130_v21 = vsub.f32 %v124_v6, %v129_v20 }
  0x82   :  { %v173_v23 = vpop.eup %172  ;;  %v131_v25 = vmul.f32 1.442695, %v130_v21 }
  0x83   :  { %v175_v26 = vpop.eup %174  ;;  %v102_v27 = vsel %vm95_vm0, %v173_v23, 0.0 }
  0x84   :  { %176 = vpow2.f32 %v131_v25  ;;  %103 = vadd.xlane.f32.xlu1 %v102_v27  ;;  %v38_v28 = vsel %vm31_vm1, %v175_v26, 0.0 }
  0x85   :  { %39 = vadd.xlane.f32.xlu0 %v38_v28 }
  0x87   :  { %v110_v35 = vpop.permute.xlu2 %109 }
  0x88   :  { %vm111_vm6 = vcmp.eq.s32.totalorder %v45_v22, %v110_v35 }
  0x89   :  { %v112_v37 = vsel %vm111_vm6, %v240_v2, 0.0 }
  0x8a   :  { %v177_v30 = vpop.eup %176  ;;  %v113_v39 = vsel %vm95_vm0, %v112_v37, 0.0 }
  0x8b   :  { %v79_v31 = vpop.permute.xlu0 %78  ;;  %v133_v33 = vsel %vm126_vm2, %v177_v30, 0.0 }
  0x8c   :  { %vm80_vm5 = vcmp.eq.s32.totalorder %v45_v22, %v79_v31  ;;  %52 = vadd.xlane.f32.xlu1 %v51_v32 }
  0x8d   :  { %134 = vadd.xlane.f32.xlu0 %v133_v33  ;;  %v81_v34 = vsel %vm80_vm5, %v62_v10, 0.0 }
  0x8e   :  { %v82_v36 = vsel %vm64_vm3, %v81_v34, 0.0 }
  0x8f   :  { %v141_v38 = vpop.permute.xlu2 %140 }
  0x90   :  { %vm142_vm7 = vcmp.eq.s32.totalorder %v45_v22, %v141_v38 }
  0x91   :  { %v143_v40 = vsel %vm142_vm7, %v124_v6, 0.0 }
  0x92   :  { %v144_v43 = vsel %vm126_vm2, %v143_v40, 0.0 }
  0x94   :  { %83 = vadd.xlane.f32.xlu1 %v82_v36 }
  0x9c   :  { %114 = vadd.xlane.f32.xlu1 %v113_v39 }
  0x9f   :  { %v67_v41 = vpop.xlane.xlu1 %66 }
  0xa0   :  { %v68_v42 = vsub.f32 %v62_v10, %v67_v41 }
  0xa2   :  { %v69_v44 = vmul.f32 1.442695, %v68_v42 }
  0xa4   :  { %145 = vadd.xlane.f32.xlu1 %v144_v43  ;;  %178 = vpow2.f32 %v69_v44 }
  0xaa   :  { %v179_v45 = vpop.eup %178 }
  0xab   :  { %v71_v46 = vsel %vm64_vm3, %v179_v45, 0.0 }
  0xac   :  { %72 = vadd.xlane.f32.xlu2 %v71_v46 }
  0xf7   :  { %v104_v47 = vpop.xlane.xlu1 %103 }
  0xf8   :  { %v40_v49 = vpop.xlane.xlu0 %39 }
  0xf9   :  { %180 = vlog2.f32 %v40_v49 }
  0xfa   :  { %182 = vlog2.f32 %v104_v47 }
  0xff   :  { %v53_v48 = vpop.xlane.xlu1 %52  ;;  %v181_v52 = vpop.eup %180 }
 0x100   :  { %v135_v51 = vpop.xlane.xlu0 %134  ;;  %v183_v54 = vpop.eup %182  ;;  %v42_v55 = vmul.f32 0.6931472, %v181_v52 }
 0x101   :  { %184 = vlog2.f32 %v135_v51  ;;  %v106_v57 = vmul.f32 0.6931472, %v183_v54 }
 0x102   :  { %v43_v58 = vadd.f32 %v42_v55, %v267_v14 }
 0x103   :  { %v107_v60 = vadd.f32 %v106_v57, %v265_v13 }
 0x104   :  { %v54_v62 = vsub.f32 %v43_v58, %v53_v48 }
 0x106   :  { %v55_v3 = vrot.slane %v54_v62, 4 }
 0x107   :  { %v84_v50 = vpop.xlane.xlu1 %83  ;;  %v185_v56 = vpop.eup %184 }
 0x108   :  { %v137_v59 = vmul.f32 0.6931472, %v185_v56  ;;  %v56_v6 = vadd.f32 %v55_v3, %v54_v62 }
 0x10a   :  { %v138_v63 = vadd.f32 %v137_v59, %v129_v20  ;;  %v57_v11 = vrot.slane %v56_v6, 2 }
 0x10c   :  { %v58_v16 = vadd.f32 %v57_v11, %v56_v6 }
 0x10e   :  { %v59_v21 = vrot.slane %v58_v16, 1 }
 0x10f   :  { %v115_v53 = vpop.xlane.xlu1 %114 }
 0x110   :  { %v116_v0 = vsub.f32 %v107_v60, %v115_v53  ;;  %v60_v26 = vadd.f32 %v59_v21, %v58_v16 }
 0x112   :  { %v117_v4 = vrot.slane %v116_v0, 4  ;;  %v61_v31 = vmul.f32 0.125, %v60_v26 }
 0x114   :  { %v118_v8 = vadd.f32 %v117_v4, %v116_v0 }
 0x116   :  { %v119_v14 = vrot.slane %v118_v8, 2 }
 0x117   :  { %v146_v61 = vpop.xlane.xlu1 %145 }
 0x118   :  { %v147_v1 = vsub.f32 %v138_v63, %v146_v61  ;;  %v120_v18 = vadd.f32 %v119_v14, %v118_v8 }
 0x11a   :  { %v148_v5 = vrot.slane %v147_v1, 4  ;;  %v121_v23 = vrot.slane %v120_v18, 1 }
 0x11c   :  { %v149_v9 = vadd.f32 %v148_v5, %v147_v1  ;;  %v122_v28 = vadd.f32 %v121_v23, %v120_v18 }
 0x11e   :  { %v150_v15 = vrot.slane %v149_v9, 2  ;;  %v123_v33 = vmul.f32 0.125, %v122_v28 }
 0x11f   :  { %v73_v2 = vpop.xlane.xlu2 %72 }
 0x120   :  { %186 = vlog2.f32 %v73_v2  ;;  %v151_v19 = vadd.f32 %v150_v15, %v149_v9 }
 0x122   :  { %v152_v24 = vrot.slane %v151_v19, 1 }
 0x124   :  { %v153_v29 = vadd.f32 %v152_v24, %v151_v19 }
 0x126   :  { %v187_v7 = vpop.eup %186  ;;  %v154_v34 = vmul.f32 0.125, %v153_v29 }
 0x127   :  { %v75_v10 = vmul.f32 0.6931472, %v187_v7 }
 0x129   :  { %v76_v12 = vadd.f32 %v75_v10, %v67_v41 }
 0x12b   :  { %v85_v13 = vsub.f32 %v76_v12, %v84_v50 }
 0x12d   :  { %v86_v17 = vrot.slane %v85_v13, 4 }
 0x12f   :  { %v87_v20 = vadd.f32 %v86_v17, %v85_v13 }
 0x131   :  { %v88_v22 = vrot.slane %v87_v20, 2 }
 0x133   :  { %v89_v25 = vadd.f32 %v88_v22, %v87_v20 }
 0x135   :  { %v90_v27 = vrot.slane %v89_v25, 1 }
 0x137   :  { %v91_v30 = vadd.f32 %v90_v27, %v89_v25 }
 0x139   :  { %v92_v32 = vmul.f32 0.125, %v91_v30 }
 0x13b   :  { %v156_v35 = vsel %vm155_vm8, %v61_v31, %v92_v32 }
 0x13c   :  { %v158_v36 = vsel %vm157_vm9, %v156_v35, %v123_v33 }
 0x13d   :  { %v160_v37 = vsel %vm159_vm10, %v158_v36, %v154_v34 }
 0x13e   :  { %v162_v38 = vsel %vm161_vm11, %v160_v37, 0.0 }
 0x13f   :  { %163 = vst [vmem:[%s294_s8] sm:$0xff] %v162_v38 }

</bundles_post_ra>
